<compile_context>
chip_gen: v6e
topology: v6e:2x2x1
jax: 0.10.0
libtpu: 0.0.40
codegen_flags: <defaults>
</compile_context>

<pallas_src>
import numpy as np
import jax
import jax.numpy as jnp
from jax.experimental import pallas as pl
from jax.experimental.pallas import tpu as pltpu

N_STATES = 4            # number of qubits / input features
N_ACTIONS = 4           # maze actions
DIM = 2 ** N_STATES     # statevector dimension (16)
STACK = 2 * DIM         # Re/Im stacked (32)

DEFAULT_TILE_B = 16384  # ~8 MiB of per-step VMEM -> safe on v5e/v6e/v7x defaults
_MIN_SPLIT = 2048       # past this many padded samples, force >=2 grid steps (v7x megacore)


# ----------------------- host-side glue: fixed circuit unitary -----------------------

def _rot(phi, theta, omega):
    """PennyLane qml.Rot(phi, theta, omega) = RZ(omega) RY(theta) RZ(phi)."""
    c, s = np.cos(theta / 2.0), np.sin(theta / 2.0)
    return np.array(
        [[np.exp(-1j * (phi + omega) / 2) * c, -np.exp(1j * (phi - omega) / 2) * s],
         [np.exp(-1j * (phi - omega) / 2) * s,  np.exp(1j * (phi + omega) / 2) * c]],
        dtype=np.complex128)


def _apply_1q(U, gate, wire, n):
    D = 2 ** n
    T = U.reshape((2,) * n + (D,))
    T = np.tensordot(gate, T, axes=([1], [wire]))
    T = np.moveaxis(T, 0, wire)
    return T.reshape(D, D)


def _apply_cnot(U, ctrl, tgt, n):
    D = 2 ** n
    G = np.zeros((2, 2, 2, 2), dtype=np.complex128)
    for ci in range(2):
        for ti in range(2):
            G[ci, ti ^ ci, ci, ti] = 1.0
    T = U.reshape((2,) * n + (D,))
    T = np.tensordot(G, T, axes=([2, 3], [ctrl, tgt]))
    T = np.moveaxis(T, [0, 1], [ctrl, tgt])
    return T.reshape(D, D)


def strongly_entangling_unitary(weights):
    """Exact unitary of qml.StronglyEntanglingLayers(weights, wires=range(n))."""
    n_layers, n, _ = weights.shape
    U = np.eye(2 ** n, dtype=np.complex128)
    for l in range(n_layers):
        for w in range(n):
            U = _apply_1q(U, _rot(*weights[l, w]), w, n)
        if n > 1:
            r = (l % (n - 1)) + 1          # PennyLane default `ranges`
            for w in range(n):
                U = _apply_cnot(U, w, (w + r) % n, n)
    return U


# ------------------------------------ Pallas kernel ------------------------------------

def net_kernel(xT_ref, sel_s_ref, wstackT_ref, mT_ref, fcbT_ref, outT_ref):
    # F.relu(inputs) — feature-major: (n, TILE_B), batch rides the lane axis.
    xT = jnp.maximum(xT_ref[...], 0.0)
    c = jnp.cos(0.5 * xT)                         # RX(x)|0> amplitudes
    s = jnp.sin(0.5 * xT)

    sel_s = sel_s_ref[...]                        # (D, n)  bit_i(d)
    n = xT.shape[0]

    # AngleEmbedding product-state magnitude, one column per sample: (D, TILE_B).
    # (The (-i)^popcount(d) phase is folded into W' on the host, so this is real.)
    # Per-qubit factor = c_i + bit*(s_i - c_i): one broadcast-mul fewer than the
    # sel_s*s + sel_c*c form and one fewer constant input.
    mag = c[0:1, :] + sel_s[:, 0:1] * (s[0:1, :] - c[0:1, :])
    for i in range(1, n):                         # n is tiny & static
        mag = mag * (c[i:i + 1, :] + sel_s[:, i:i + 1] * (s[i:i + 1, :] - c[i:i + 1, :]))

    # psi = W' @ mag, Re/Im stacked -> one real MXU matmul, (2D, TILE_B).
    psi = jnp.dot(wstackT_ref[...], mag, preferred_element_type=jnp.float32)
    probs = psi[:DIM, :] * psi[:DIM, :] + psi[DIM:, :] * psi[DIM:, :]   # (D, TILE_B)

    # out^T = M^T @ probs + b, with M = zsign @ fc_W^T folded on host. Lane-dense store.
    outT_ref[...] = (jnp.dot(mT_ref[...], probs, preferred_element_type=jnp.float32)
                     + fcbT_ref[...])


def _round_up(a, m):
    return ((a + m - 1) // m) * m


def _choose_tiling(B, tile_b):
    """Exact grid (no partial blocks), pad inflation < steps*128, tile <= tile_b."""
    b128 = _round_up(max(B, 1), 128)
    tile_cap = max(128, _round_up(tile_b, 128))
    steps = -(-b128 // tile_cap)                      # ceil
    if b128 >= _MIN_SPLIT:
        steps = max(steps, 2)                         # >=2 steps -> megacore split on v7x
    tile = _round_up(-(-b128 // steps), 128)
    b_pad = steps * tile
    return b_pad, tile, steps


def net_forward_tmajor(xT, params, tile_b=DEFAULT_TILE_B):
    """Feature-major fast path: xT is (N_STATES, B); returns (N_ACTIONS, B).

    No wrapper-side transpose/relayout passes — only a small zero pad on the
    batch (lane) axis when B is not already a multiple of the tile size.
    """
    n, B = xT.shape
    assert n == N_STATES
    b_pad, tile, steps = _choose_tiling(B, tile_b)

    xT = xT.astype(jnp.float32)
    if b_pad != B:
        xT = jnp.pad(xT, ((0, 0), (0, b_pad - B)))    # pad columns are harmless

    const = lambda i: (0, 0)   # constants: DMA'd once, VMEM-resident across all steps
    outT = pl.pallas_call(
        net_kernel,
        out_shape=jax.ShapeDtypeStruct((N_ACTIONS, b_pad), jnp.float32),
        grid=(steps,),
        in_specs=[
            pl.BlockSpec((N_STATES, tile), lambda i: (0, i)),     # streamed x^T
            pl.BlockSpec((DIM, N_STATES), const),                 # sel_s (bits)
            pl.BlockSpec((STACK, DIM), const),                    # [Re(W'); Im(W')]
            pl.BlockSpec((N_ACTIONS, DIM), const),                # M^T
            pl.BlockSpec((N_ACTIONS, 1), const),                  # fc bias (column)
        ],
        out_specs=pl.BlockSpec((N_ACTIONS, tile), lambda i: (0, i)),
        compiler_params=pltpu.CompilerParams(
            dimension_semantics=("parallel",),                    # megacore on v7x
            vmem_limit_bytes=32 * 1024 * 1024),                   # headroom on v5e
    )(xT, params["sel_s"], params["wstackT"], params["mT"], params["fcbT"])

    return outT[:, :B]


def net_forward(x, params, tile_b=DEFAULT_TILE_B):
    """Convenience wrapper for the module's natural (B, N_STATES) layout.

    Large-batch / perf-critical callers should feed feature-major data to
    `net_forward_tmajor` directly to avoid the host-side transpose passes.
    """
    xT = jnp.asarray(x, jnp.float32).T
    return net_forward_tmajor(xT, params, tile_b).T


# --------------------------------- parameter construction ---------------------------------

def build_params(key):
    kw, kfc_w, kfc_b = jax.random.split(key, 3)

    # nn.Parameter(torch.randn(n_states, n_states, 3))
    ent_weights = np.asarray(
        jax.random.normal(kw, (N_STATES, N_STATES, 3), jnp.float32), dtype=np.float64)
    W = strongly_entangling_unitary(ent_weights)                        # (D, D) complex128

    d = np.arange(DIM)
    shifts = N_STATES - 1 - np.arange(N_STATES)
    bits = ((d[:, None] >> shifts[None, :]) & 1).astype(np.float64)     # (D, n), wire0 = MSB
    popcnt = bits.sum(axis=1)
    phase = (-1j) ** popcnt                                             # (D,)

    # Fold the input-independent embedding phase into the circuit unitary: W' = W diag(phase)
    Wp = W * phase[None, :]
    wstackT = np.concatenate([np.real(Wp), np.imag(Wp)], axis=0)        # (2D, D)

    # fc.weight ~ N(0, 0.1); fc.bias keeps default U(-1/sqrt(n), 1/sqrt(n))
    fc_w = np.asarray(0.1 * jax.random.normal(kfc_w, (N_ACTIONS, N_STATES), jnp.float32),
                      dtype=np.float64)
    bound = 1.0 / np.sqrt(N_STATES)
    fc_b = np.asarray(jax.random.uniform(kfc_b, (N_ACTIONS,), jnp.float32, -bound, bound),
                      dtype=np.float64)

    # Fold <Z_i> signs and the fc weight together: M = zsign @ fc_W^T.
    zsign = 1.0 - 2.0 * bits                                            # (D, n)
    M = zsign @ fc_w.T                                                  # (D, n_actions)

    params = dict(
        sel_s=jnp.asarray(bits, jnp.float32),                           # (D, n)
        wstackT=jnp.asarray(wstackT, jnp.float32),                      # (2D, D)
        mT=jnp.asarray(M.T, jnp.float32),                               # (n_actions, D)
        fcbT=jnp.asarray(fc_b[:, None], jnp.float32),                   # (n_actions, 1)
    )
    return params, ent_weights, fc_w, fc_b


# ------------------------------------- host reference -------------------------------------

def reference_forward(x, ent_weights, fc_w, fc_b):
    x = np.maximum(np.asarray(x, np.float64), 0.0)
    W = strongly_entangling_unitary(ent_weights)
    B = x.shape[0]
    expz = np.zeros((B, N_STATES))
    d = np.arange(DIM)
    for b in range(B):
        state = np.array([1.0 + 0j])
        for i in range(N_STATES):
            state = np.kron(state, np.array([np.cos(x[b, i] / 2),
                                             -1j * np.sin(x[b, i] / 2)]))
        psi = W @ state
        p = np.abs(psi) ** 2
        for i in range(N_STATES):
            sign = 1.0 - 2.0 * ((d >> (N_STATES - 1 - i)) & 1)
            expz[b, i] = np.sum(p * sign)
    return expz @ np.asarray(fc_w, np.float64).T + np.asarray(fc_b, np.float64)


if __name__ == "__main__":
    key = jax.random.PRNGKey(0)
    kp, kx = jax.random.split(key)
    params, ent_w, fc_w, fc_b = build_params(kp)

    B = 2
    x = jax.random.normal(kx, (B, N_STATES), jnp.float32)

    out = jax.block_until_ready(net_forward(x, params))
    ref = reference_forward(np.asarray(x), ent_w, fc_w, fc_b)

    assert out.shape == (B, N_ACTIONS)
    assert np.allclose(np.asarray(out), ref, atol=1e-2, rtol=1e-2), (np.asarray(out), ref)
    print("KERNEL_OK")
</pallas_src>

<mosaic_0001>
module attributes {stable_mosaic.version = 11 : i64} {
  func.func @net_kernel(%arg0: i32, %arg1: memref<4x128xf32, #tpu.memory_space<vmem>>, %arg2: memref<16x4xf32, #tpu.memory_space<vmem>>, %arg3: memref<32x16xf32, #tpu.memory_space<vmem>>, %arg4: memref<4x16xf32, #tpu.memory_space<vmem>>, %arg5: memref<4x1xf32, #tpu.memory_space<vmem>>, %arg6: memref<4x128xf32, #tpu.memory_space<vmem>>) attributes {dimension_semantics = [#tpu.dimension_semantics<parallel>], iteration_bounds = array<i64: 1>, scalar_prefetch = 0 : i64, scratch_operands = 0 : i64, tpu.core_type = #tpu.core_type<tc>, window_params = [{transform_indices = @transform_0, window_bounds = array<i64: 4, 128>}, {pipeline_mode = #tpu.pipeline_mode<synchronous>, transform_indices = @transform_1, window_bounds = array<i64: 16, 4>}, {pipeline_mode = #tpu.pipeline_mode<synchronous>, transform_indices = @transform_2, window_bounds = array<i64: 32, 16>}, {pipeline_mode = #tpu.pipeline_mode<synchronous>, transform_indices = @transform_3, window_bounds = array<i64: 4, 16>}, {pipeline_mode = #tpu.pipeline_mode<synchronous>, transform_indices = @transform_4, window_bounds = array<i64: 4, 1>}, {transform_indices = @transform_5, window_bounds = array<i64: 4, 128>}]} {
    %c0 = arith.constant 0 : index
    %c0_0 = arith.constant 0 : index
    %0 = vector.load %arg1[%c0, %c0_0] : memref<4x128xf32, #tpu.memory_space<vmem>>, vector<4x128xf32>
    %cst = arith.constant 0.000000e+00 : f32
    %1 = vector.broadcast %cst : f32 to vector<4x128xf32>
    %2 = arith.maximumf %0, %1 : vector<4x128xf32>
    %cst_1 = arith.constant 5.000000e-01 : f32
    %3 = vector.broadcast %cst_1 : f32 to vector<4x128xf32>
    %4 = arith.mulf %3, %2 : vector<4x128xf32>
    %5 = math.cos %4 : vector<4x128xf32>
    %cst_2 = arith.constant 5.000000e-01 : f32
    %6 = vector.broadcast %cst_2 : f32 to vector<4x128xf32>
    %7 = arith.mulf %6, %2 : vector<4x128xf32>
    %8 = math.sin %7 : vector<4x128xf32>
    %c0_3 = arith.constant 0 : index
    %c0_4 = arith.constant 0 : index
    %9 = vector.load %arg2[%c0_3, %c0_4] : memref<16x4xf32, #tpu.memory_space<vmem>>, vector<16x4xf32>
    %10 = vector.extract_strided_slice %5 {offsets = [0, 0], sizes = [1, 128], strides = [1, 1]} : vector<4x128xf32> to vector<1x128xf32>
    %11 = vector.extract_strided_slice %9 {offsets = [0, 0], sizes = [16, 1], strides = [1, 1]} : vector<16x4xf32> to vector<16x1xf32>
    %12 = vector.extract_strided_slice %8 {offsets = [0, 0], sizes = [1, 128], strides = [1, 1]} : vector<4x128xf32> to vector<1x128xf32>
    %13 = vector.extract_strided_slice %5 {offsets = [0, 0], sizes = [1, 128], strides = [1, 1]} : vector<4x128xf32> to vector<1x128xf32>
    %14 = arith.subf %12, %13 : vector<1x128xf32>
    %15 = vector.broadcast %11 : vector<16x1xf32> to vector<16x128xf32>
    %16 = vector.broadcast %14 : vector<1x128xf32> to vector<16x128xf32>
    %17 = arith.mulf %15, %16 : vector<16x128xf32>
    %18 = vector.broadcast %10 : vector<1x128xf32> to vector<16x128xf32>
    %19 = arith.addf %18, %17 : vector<16x128xf32>
    %20 = vector.extract_strided_slice %5 {offsets = [1, 0], sizes = [1, 128], strides = [1, 1]} : vector<4x128xf32> to vector<1x128xf32>
    %21 = vector.extract_strided_slice %9 {offsets = [0, 1], sizes = [16, 1], strides = [1, 1]} : vector<16x4xf32> to vector<16x1xf32>
    %22 = vector.extract_strided_slice %8 {offsets = [1, 0], sizes = [1, 128], strides = [1, 1]} : vector<4x128xf32> to vector<1x128xf32>
    %23 = vector.extract_strided_slice %5 {offsets = [1, 0], sizes = [1, 128], strides = [1, 1]} : vector<4x128xf32> to vector<1x128xf32>
    %24 = arith.subf %22, %23 : vector<1x128xf32>
    %25 = vector.broadcast %21 : vector<16x1xf32> to vector<16x128xf32>
    %26 = vector.broadcast %24 : vector<1x128xf32> to vector<16x128xf32>
    %27 = arith.mulf %25, %26 : vector<16x128xf32>
    %28 = vector.broadcast %20 : vector<1x128xf32> to vector<16x128xf32>
    %29 = arith.addf %28, %27 : vector<16x128xf32>
    %30 = arith.mulf %19, %29 : vector<16x128xf32>
    %31 = vector.extract_strided_slice %5 {offsets = [2, 0], sizes = [1, 128], strides = [1, 1]} : vector<4x128xf32> to vector<1x128xf32>
    %32 = vector.extract_strided_slice %9 {offsets = [0, 2], sizes = [16, 1], strides = [1, 1]} : vector<16x4xf32> to vector<16x1xf32>
    %33 = vector.extract_strided_slice %8 {offsets = [2, 0], sizes = [1, 128], strides = [1, 1]} : vector<4x128xf32> to vector<1x128xf32>
    %34 = vector.extract_strided_slice %5 {offsets = [2, 0], sizes = [1, 128], strides = [1, 1]} : vector<4x128xf32> to vector<1x128xf32>
    %35 = arith.subf %33, %34 : vector<1x128xf32>
    %36 = vector.broadcast %32 : vector<16x1xf32> to vector<16x128xf32>
    %37 = vector.broadcast %35 : vector<1x128xf32> to vector<16x128xf32>
    %38 = arith.mulf %36, %37 : vector<16x128xf32>
    %39 = vector.broadcast %31 : vector<1x128xf32> to vector<16x128xf32>
    %40 = arith.addf %39, %38 : vector<16x128xf32>
    %41 = arith.mulf %30, %40 : vector<16x128xf32>
    %42 = vector.extract_strided_slice %5 {offsets = [3, 0], sizes = [1, 128], strides = [1, 1]} : vector<4x128xf32> to vector<1x128xf32>
    %43 = vector.extract_strided_slice %9 {offsets = [0, 3], sizes = [16, 1], strides = [1, 1]} : vector<16x4xf32> to vector<16x1xf32>
    %44 = vector.extract_strided_slice %8 {offsets = [3, 0], sizes = [1, 128], strides = [1, 1]} : vector<4x128xf32> to vector<1x128xf32>
    %45 = vector.extract_strided_slice %5 {offsets = [3, 0], sizes = [1, 128], strides = [1, 1]} : vector<4x128xf32> to vector<1x128xf32>
    %46 = arith.subf %44, %45 : vector<1x128xf32>
    %47 = vector.broadcast %43 : vector<16x1xf32> to vector<16x128xf32>
    %48 = vector.broadcast %46 : vector<1x128xf32> to vector<16x128xf32>
    %49 = arith.mulf %47, %48 : vector<16x128xf32>
    %50 = vector.broadcast %42 : vector<1x128xf32> to vector<16x128xf32>
    %51 = arith.addf %50, %49 : vector<16x128xf32>
    %52 = arith.mulf %41, %51 : vector<16x128xf32>
    %c0_5 = arith.constant 0 : index
    %c0_6 = arith.constant 0 : index
    %53 = vector.load %arg3[%c0_5, %c0_6] : memref<32x16xf32, #tpu.memory_space<vmem>>, vector<32x16xf32>
    %cst_7 = arith.constant dense<0.000000e+00> : vector<32x128xf32>
    %54 = tpu.matmul %53, %52, %cst_7 {dimension_numbers = #tpu.dot_dimension_numbers<[1], [0], [0], [1], [0, 0, 1, 1], [], []>} : vector<32x16xf32>, vector<16x128xf32>, vector<32x128xf32> -> vector<32x128xf32>
    %55 = vector.extract_strided_slice %54 {offsets = [0, 0], sizes = [16, 128], strides = [1, 1]} : vector<32x128xf32> to vector<16x128xf32>
    %56 = vector.extract_strided_slice %54 {offsets = [0, 0], sizes = [16, 128], strides = [1, 1]} : vector<32x128xf32> to vector<16x128xf32>
    %57 = arith.mulf %55, %56 : vector<16x128xf32>
    %58 = vector.extract_strided_slice %54 {offsets = [16, 0], sizes = [16, 128], strides = [1, 1]} : vector<32x128xf32> to vector<16x128xf32>
    %59 = vector.extract_strided_slice %54 {offsets = [16, 0], sizes = [16, 128], strides = [1, 1]} : vector<32x128xf32> to vector<16x128xf32>
    %60 = arith.mulf %58, %59 : vector<16x128xf32>
    %61 = arith.addf %57, %60 : vector<16x128xf32>
    %c0_8 = arith.constant 0 : index
    %c0_9 = arith.constant 0 : index
    %62 = vector.load %arg4[%c0_8, %c0_9] : memref<4x16xf32, #tpu.memory_space<vmem>>, vector<4x16xf32>
    %cst_10 = arith.constant dense<0.000000e+00> : vector<4x128xf32>
    %63 = tpu.matmul %62, %61, %cst_10 {dimension_numbers = #tpu.dot_dimension_numbers<[1], [0], [0], [1], [0, 0, 1, 1], [], []>} : vector<4x16xf32>, vector<16x128xf32>, vector<4x128xf32> -> vector<4x128xf32>
    %c0_11 = arith.constant 0 : index
    %c0_12 = arith.constant 0 : index
    %64 = vector.load %arg5[%c0_11, %c0_12] : memref<4x1xf32, #tpu.memory_space<vmem>>, vector<4x1xf32>
    %65 = vector.broadcast %64 : vector<4x1xf32> to vector<4x128xf32>
    %66 = arith.addf %63, %65 : vector<4x128xf32>
    %c0_13 = arith.constant 0 : index
    %c0_14 = arith.constant 0 : index
    %67 = vector.load %arg6[%c0_13, %c0_14] : memref<4x128xf32, #tpu.memory_space<vmem>>, vector<4x128xf32>
    tpu.vector_store %arg6[%c0_13, %c0_14], %66 {strides = array<i32>} : memref<4x128xf32, #tpu.memory_space<vmem>>, vector<4x128xf32>,
    return
  }
  func.func @transform_0(%arg0: i32) -> (i32, i32) {
    %c0_i32 = arith.constant 0 : i32
    %c0_i32_0 = arith.constant 0 : i32
    return %c0_i32, %arg0 : i32, i32
  }
  func.func @transform_1(%arg0: i32) -> (i32, i32) {
    %c0_i32 = arith.constant 0 : i32
    %c0_i32_0 = arith.constant 0 : i32
    %c0_i32_1 = arith.constant 0 : i32
    return %c0_i32, %c0_i32_0 : i32, i32
  }
  func.func @transform_2(%arg0: i32) -> (i32, i32) {
    %c0_i32 = arith.constant 0 : i32
    %c0_i32_0 = arith.constant 0 : i32
    %c0_i32_1 = arith.constant 0 : i32
    return %c0_i32, %c0_i32_0 : i32, i32
  }
  func.func @transform_3(%arg0: i32) -> (i32, i32) {
    %c0_i32 = arith.constant 0 : i32
    %c0_i32_0 = arith.constant 0 : i32
    %c0_i32_1 = arith.constant 0 : i32
    return %c0_i32, %c0_i32_0 : i32, i32
  }
  func.func @transform_4(%arg0: i32) -> (i32, i32) {
    %c0_i32 = arith.constant 0 : i32
    %c0_i32_0 = arith.constant 0 : i32
    %c0_i32_1 = arith.constant 0 : i32
    return %c0_i32, %c0_i32_0 : i32, i32
  }
  func.func @transform_5(%arg0: i32) -> (i32, i32) {
    %c0_i32 = arith.constant 0 : i32
    %c0_i32_0 = arith.constant 0 : i32
    return %c0_i32, %arg0 : i32, i32
  }
}

</mosaic_0001>

<bundles_post_ra>
// kernel: tpu_custom_call.1
= control target key start
LH: loop header
LB: loop body
LE: loop exit
PB: predicated region body
PF: predicated region fallthrough
CT: control target
= control target key end

     0   :  { %v615_v2 = vmov 0   ;;  %s717_s0 = inlined_call_operand.vmem [shape: f32[4,128], index: 0, kind: input, shape index: {}]   ;;  %s718_s1 = inlined_call_operand.vmem [shape: f32[16,4], index: 1, kind: input, shape index: {}]   ;;  %s719_s2 = inlined_call_operand.vmem [shape: f32[32,16], index: 2, kind: input, shape index: {}]   ;;  %s720_s3 = inlined_call_operand.vmem [shape: f32[4,16], index: 3, kind: input, shape index: {}]   ;;  %s721_s4 = inlined_call_operand.vmem [shape: f32[4,1], index: 4, kind: input, shape index: {}]   ;;  %s722_s5 = inlined_call_operand.hbm [shape: f32[4,128], index: 5, kind: output, shape index: {}]  }
   0x1   :  { %v232_v0 = vld [vmem:[%s718_s1 + $0x8] sm:$0xff]  ;;  %v231_v1 = vld [vmem:[%s718_s1] sm:$0xff]  ;;  %583 = vset.pattern.permute.xlu1 %v615_v2  ;;  %581 = vset.pattern.permute.xlu0 %v615_v2 }
   0x2   :  { %v21_v3 = vld [vmem:[%s717_s0] sm:$0xf]  ;;  %241 = vperm.xlu0 %581, %v232_v0   ;;  %236 = vperm.xlu1 %583, %v231_v1  }
   0x3   :  { %v22_v4 = vmax.f32 %v21_v3, 0.0 }
   0x5   :  { %v667_v5 = vmul.f32 0.5, %v22_v4 }
   0x6   :  { %10 = vsyncpa [#allocation3], 0  ;;  %v616_v6 = vmov 1   ;;  %v617_v11 = vmov 2   ;;  %v618_v16 = vmov 3   ;;  %v322_v43 = vld [vmem:[%s719_s2] sm:$0xff] }
   0x7   :  { %582 = vset.pattern.permute.xlu0 %v616_v6  ;;  %584 = vset.pattern.permute.xlu1 %v616_v6  ;;  %v27_v7 = vand.u32 2139095040, %v667_v5  ;;  %v24_v8 = vand.u32 2147483647, %v667_v5  ;;  %v619_v20 = vmov 683565275   ;;  %vm326_vm5 = vcmask 130048  }
   0x8   :  { %261 = vperm.xlu0 %582, %v232_v0   ;;  %257 = vperm.xlu1 %584, %v231_v1   ;;  %v620_v22 = vmov 2475754826   ;;  %v621_v24 = vmov 2131351028   ;;  %v622_v26 = vmov 2102212464  }
   0x9   :  { %v28_v9 = vshrl.u32 %v27_v7, 23  ;;  %v31_v12 = vand.u32 8388607, %v24_v8  ;;  %v623_v28 = vmov 920167782   ;;  %551 = vmatprep.mubr.msk.f32.mxu0 %vm326_vm5, %v322_v43  ;;  %vm26_vm8 = vcmp.lt.s32.totalorder %v667_v5, 0 }
   0xa   :  { %v624_v36 = vmov 1326507024   ;;  %vm25_vm9 = vcmp.le.f32.partialorder %v24_v8, 0.7853982 }
   0xb   :  { %v525_v10 = vadd.s32 4294967169, %v28_v9  ;;  %v32_v14 = vor.u32 8388608, %v31_v12 }
   0xc   :  { %586 = vset.pattern.permute.xlu0 %v617_v11  ;;  %585 = vset.pattern.permute.xlu1 %v617_v11 }
   0xd   :  { %279 = vperm.xlu0 %586, %v231_v1   ;;  %283 = vperm.xlu1 %585, %v232_v0   ;;  %v34_v13 = vadd.s32 1, %v525_v10  ;;  %v72_v30 = vshll.u32 %v32_v14, 8 }
   0xf   :  { %vm35_vm0 = vcmp.gt.s32.totalorder %v34_v13, 0 }
  0x10   :  { %v36_v15 = vsel %vm35_vm0, %v34_v13, 0  ;;  %vm116_vm0 = vweird.f32 %v667_v5 }
  0x11   :  { %587 = vset.pattern.permute.xlu1 %v618_v16  ;;  %v38_v17 = vand.u32 31, %v36_v15  ;;  %588 = vset.pattern.permute.xlu0 %v615_v2  ;;  %v37_v18 = vshrl.u32 %v36_v15, 5 }
  0x12   :  { %305 = vperm.xlu1 %587, %v232_v0  }
  0x13   :  { %v39_v19 = vsub.s32 32, %v38_v17  ;;  %v41_v21 = vshll.u32 %v619_v20, %v38_v17  ;;  %v44_v23 = vshll.u32 %v620_v22, %v38_v17  ;;  %v47_v25 = vshll.u32 %v621_v24, %v38_v17 }
  0x14   :  { %v50_v27 = vshll.u32 %v622_v26, %v38_v17  ;;  %v53_v29 = vshll.u32 %v623_v28, %v38_v17  ;;  %vm56_vm1 = vcmp.lt.s32.totalorder %v37_v18, 1  ;;  %vm57_vm2 = vcmp.lt.s32.totalorder %v37_v18, 2 }
  0x15   :  { %v40_v31 = vshrl.u32 %v619_v20, %v39_v19  ;;  %v42_v32 = vshrl.u32 %v620_v22, %v39_v19  ;;  %v45_v33 = vshrl.u32 %v621_v24, %v39_v19  ;;  %v48_v34 = vshrl.u32 %v622_v26, %v39_v19 }
  0x16   :  { %301 = vperm.xlu1 %587, %v231_v1   ;;  %v51_v35 = vshrl.u32 %v623_v28, %v39_v19  ;;  %v54_v37 = vshrl.u32 %v624_v36, %v39_v19  ;;  %vm59_vm3 = vcmp.lt.s32.totalorder %v37_v18, 4  ;;  %vm58_vm4 = vcmp.lt.s32.totalorder %v37_v18, 3 }
  0x17   :  { %v43_v38 = vor.u32 %v42_v32, %v41_v21  ;;  %v46_v39 = vor.u32 %v45_v33, %v44_v23  ;;  %v49_v40 = vor.u32 %v48_v34, %v47_v25 }
  0x18   :  { %v52_v41 = vor.u32 %v51_v35, %v50_v27  ;;  %v55_v42 = vor.u32 %v54_v37, %v53_v29 }
  0x19   :  { %v60_v44 = vsel %vm56_vm1, %v40_v31, %v43_v38  ;;  %v61_v45 = vsel %vm59_vm3, %v49_v40, 2102212464  ;;  %v64_v46 = vsel %vm56_vm1, %v43_v38, %v46_v39  ;;  %v68_v47 = vsel %vm56_vm1, %v46_v39, %v49_v40 }
  0x1a   :  { %v62_v48 = vsel %vm58_vm4, %v46_v39, %v61_v45  ;;  %v65_v49 = vsel %vm59_vm3, %v52_v41, 920167782  ;;  %v69_v50 = vsel %vm59_vm3, %v55_v42, 1326507024  ;;  %v244_v39 = vlaneseq }
  0x1b   :  { %v66_v51 = vsel %vm58_vm4, %v49_v40, %v65_v49  ;;  %v70_v52 = vsel %vm58_vm4, %v52_v41, %v69_v50  ;;  %v63_v53 = vsel %vm57_vm2, %v60_v44, %v62_v48  ;;  %vm626_vm1 = vmmov 0  }
  0x1c   :  { %v67_v54 = vsel %vm57_vm2, %v64_v46, %v66_v51  ;;  %v71_v55 = vsel %vm57_vm2, %v68_v47, %v70_v52  ;;  %v79_v60 = vmul.u32 %v72_v30, %v63_v53  ;;  %v245_v42 = vshrl.u32 %v244_v39, 7  ;;  %v430_v39 = vld [vmem:[%s720_s3] sm:$0xf] }
  0x1d   :  { %v680_v56 = vmul.u32.u64.low %v72_v30, %v71_v55  ;;  %v681_v57 = vmul.u32.u64.high %v72_v30, %v71_v55, %v680_v56  ;;  %v683_v58 = vmul.u32.u64.low %v72_v30, %v67_v54  ;;  %v684_v59 = vmul.u32.u64.high %v72_v30, %v67_v54, %v683_v58 }
  0x1e   :  { %v246_v45 = vsub.s32 0, %v245_v42  ;;  %v266_v49 = vsub.s32 1, %v245_v42  ;;  %v288_v50 = vsub.s32 2, %v245_v42 }
  0x1f   :  { %vm81_vm6 = vc.u32 %v681_v57, %v683_v58  ;;  %v82_v61 = vadd.s32 1, %v684_v59  ;;  %v80_v12 = vadd.s32 %v683_v58, %v681_v57 }
  0x21   :  { %v83_v62 = vsel %vm81_vm6, %v82_v61, %v684_v59  ;;  %v310_v59 = vsub.s32 3, %v245_v42 }
  0x22   :  { %v84_v63 = vadd.s32 %v83_v62, %v79_v60 }
  0x24   :  { %v85_v0 = vadd.s32 536870912, %v84_v63 }
  0x26   :  { %v86_v1 = vshrl.u32 %v85_v0, 30 }
  0x28   :  { %v87_v2 = vshll.u32 %v86_v1, 30  ;;  %v110_v26 = vsub.s32 4, %v86_v1 }
  0x2a   :  { %v88_v3 = vsub.s32 %v84_v63, %v87_v2  ;;  %v111_v27 = vsel %vm26_vm8, %v110_v26, %v86_v1  ;;  %v324_v26 = vld [vmem:[%s719_s2 + $0x10] sm:$0xff] }
  0x2b   :  { %v113_v28 = vsel %vm25_vm9, 0, %v111_v27  ;;  %v325_v27 = vld [vmem:[%s719_s2 + $0x18] sm:$0xff] }
  0x2c   :  { %v90_v4 = vsub.s32 0, %v88_v3  ;;  %v220_v29 = vadd.s32 3, %v113_v28  ;;  %v117_v32 = vand.u32 3, %v113_v28  ;;  %v625_v28 = vmov 0.0  }
  0x2d   :  { %557 = vmatprep.subr.mxu1 %v625_v28  ;;  %561 = vmatprep.mubr.msk.f32.mxu1 %vm626_vm1, %v625_v28 }
  0x2e   :  { %v526_v6 = vmin.u32 %v90_v4, %v88_v3  ;;  %v221_v33 = vand.u32 3, %v220_v29  ;;  %vm119_vm10 = vcmp.eq.s32.totalorder %v117_v32, 0  ;;  %vm122_vm11 = vcmp.eq.s32.totalorder %v117_v32, 2  ;;  %v431_v29 = vld [vmem:[%s721_s4] sm:$0xf]  ;;  %s627_s4 = smov [#allocation2]  }
  0x2f   :  { %vm118_vm14 = vcmp.lt.s32.totalorder %v117_v32, 2  ;;  %434 = vperm.xlu0 %588, %v431_v29   ;;  %s517_s8 = sshll.u32 %s627_s4, 4  ;;  %s518_s8 = int_to_ptr.vmem [resolvable:$true] %s517_s8 }
  0x30   :  { %v92_v7 = vclz %v526_v6  ;;  %vm223_vm12 = vcmp.eq.s32.totalorder %v221_v33, 0  ;;  %vm226_vm13 = vcmp.eq.s32.totalorder %v221_v33, 2  ;;  %vm222_vm15 = vcmp.lt.s32.totalorder %v221_v33, 2  ;;  %s593_s9 = scalar_lea.vmem %s518_s8, 64  ;;  %p598_p1 = scmp.lt.s32.totalorder %s518_s8, %s518_s8 }
  0x31   :  { %p594_p0 = scmp.ne.s32.totalorder %s518_s8, %s593_s9  ;;  %p599_p2 = scmp.lt.s32.totalorder %s593_s9, %s593_s9 }
  0x32   :  { %v527_v9 = vadd.s32 4294967294, %v92_v7 }
  0x33   :  { %p600_p3 = por %p599_p2, %p598_p1 }
  0x34   :  { %vm528_vm7 = vcmp.lt.s32.totalorder %v527_v9, 0 }
  0x35   :  { %v95_v10 = vsel %vm528_vm7, 0, %v527_v9  ;;  %p601_p4 = pnand %p600_p3, %p594_p0 }
  0x36   :  { %v100_v11 = vsub.s32 4294967266, %v95_v10  ;;  %v96_v13 = vsub.s32 32, %v95_v10  ;;  %v97_v15 = vshll.u32 %v88_v3, %v95_v10 }
  0x38   :  { %v101_v14 = vadd.s32 127, %v100_v11  ;;  %v98_v16 = vshrl.u32 %v80_v12, %v96_v13 }
  0x3a   :  { %v102_v17 = vshll.u32 %v101_v14, 23  ;;  %v99_v18 = vor.u32 %v98_v16, %v97_v15 }
  0x3c   :  { %v103_v19 = vor.u32 4788187, %v102_v17  ;;  %v106_v21 = vcvt.s32.f32 %v99_v18 }
  0x3e   :  { %v104_v20 = vand.u32 2147483647, %v103_v19 }
  0x40   :  { %v107_v22 = vmul.f32 %v106_v21, %v104_v20 }
  0x42   :  { %v108_v23 = vxor.u32 2147483648, %v107_v22 }
  0x44   :  { %v109_v24 = vsel %vm26_vm8, %v108_v23, %v107_v22 }
  0x45   :  { %v112_v25 = vsel %vm25_vm9, %v667_v5, %v109_v24 }
  0x46   :  { %589 = vcosq.f32 %v112_v25 }
  0x47   :  { %591 = vsinq.f32 %v112_v25  ;;  %v323_v25 = vld [vmem:[%s719_s2 + $0x8] sm:$0xff] }
  0x53   :  { %v590_v30 = vpop.eup %589 }
  0x54   :  { %v592_v31 = vpop.eup %591  ;;  %v123_v35 = vxor.u32 2147483648, %v590_v30 }
  0x55   :  { %v120_v34 = vxor.u32 2147483648, %v592_v31 }
  0x56   :  { %v124_v36 = vsel %vm122_vm11, %v123_v35, %v592_v31  ;;  %v228_v38 = vsel %vm226_vm13, %v123_v35, %v592_v31 }
  0x57   :  { %v121_v8 = vsel %vm119_vm10, %v590_v30, %v120_v34  ;;  %v225_v37 = vsel %vm223_vm12, %v590_v30, %v120_v34 }
  0x58   :  { %v125_v40 = vsel %vm118_vm14, %v121_v8, %v124_v36  ;;  %v229_v41 = vsel %vm222_vm15, %v225_v37, %v228_v38 }
  0x59   :  { %v126_v43 = vsel %vm116_vm0, nan, %v125_v40  ;;  %v230_v44 = vsel %vm116_vm0, nan, %v229_v41 }
  0x5a   :  { %v233_v47 = vsub.f32 %v230_v44, %v126_v43  ;;  %v253_v58 = vrot.slane %v126_v43, %v246_v45  ;;  %v273_v5 = vrot.slane %v126_v43, %v266_v49  ;;  %v295_v62 = vrot.slane %v126_v43, %v288_v50 }
  0x5b   :  { %v317_v4 = vrot.slane %v126_v43, %v310_v59 }
  0x5c   :  { %v247_v51 = vrot.slane %v233_v47, %v246_v45  ;;  %v267_v52 = vrot.slane %v233_v47, %v266_v49  ;;  %v289_v57 = vrot.slane %v233_v47, %v288_v50  ;;  %v311_v3 = vrot.slane %v233_v47, %v310_v59 }
  0x7d   :  { %v237_v46 = vpop.permute.xlu1 %236  ;;  %v242_v48 = vpop.permute.xlu0 %241 }
  0x7e   :  { %v249_v55 = vmul.f32 %v247_v51, %v242_v48  ;;  %v248_v6 = vmul.f32 %v247_v51, %v237_v46 }
  0x80   :  { %v255_v60 = vadd.f32 %v253_v58, %v249_v55  ;;  %v254_v14 = vadd.f32 %v253_v58, %v248_v6 }
  0x83   :  { %v258_v53 = vpop.permute.xlu1 %257  ;;  %v262_v54 = vpop.permute.xlu0 %261 }
  0x84   :  { %v269_v56 = vmul.f32 %v267_v52, %v262_v54  ;;  %v268_v2 = vmul.f32 %v267_v52, %v258_v53 }
  0x86   :  { %v275_v61 = vadd.f32 %v273_v5, %v269_v56  ;;  %v274_v12 = vadd.f32 %v273_v5, %v268_v2 }
  0x88   :  { %v284_v63 = vpop.permute.xlu1 %283  ;;  %v280_v0 = vpop.permute.xlu0 %279  ;;  %v277_v7 = vmul.f32 %v275_v61, %v255_v60  ;;  %v276_v19 = vmul.f32 %v274_v12, %v254_v14 }
  0x89   :  { %v291_v1 = vmul.f32 %v289_v57, %v284_v63  ;;  %v290_v9 = vmul.f32 %v289_v57, %v280_v0 }
  0x8b   :  { %v297_v10 = vadd.f32 %v295_v62, %v291_v1  ;;  %v296_v15 = vadd.f32 %v295_v62, %v290_v9 }
  0x8d   :  { %v306_v11 = vpop.permute.xlu1 %305  ;;  %v299_v17 = vmul.f32 %v297_v10, %v277_v7  ;;  %v298_v22 = vmul.f32 %v296_v15, %v276_v19 }
  0x8e   :  { %v313_v13 = vmul.f32 %v311_v3, %v306_v11 }
  0x90   :  { %v319_v16 = vadd.f32 %v317_v4, %v313_v13 }
  0x91   :  { %v302_v18 = vpop.permute.xlu1 %301 }
  0x92   :  { %v312_v20 = vmul.f32 %v311_v3, %v302_v18  ;;  %v321_v21 = vmul.f32 %v319_v16, %v299_v17 }
  0x94   :  { %v318_v23 = vadd.f32 %v317_v4, %v312_v20  ;;  %547 = vmatprep.subr.mxu0 %v321_v21 }
  0x95   :  { %548 = vmatpush3.msra.mxu0 %v321_v21 }
  0x96   :  { %v320_v24 = vmul.f32 %v318_v23, %v298_v22 }
  0x98   :  { %549 = vmatprep.subr.mxu0 %v320_v24 }
  0x99   :  { %550 = vmatpush3.msra.mxu0 %v320_v24 }
  0x9a   :  { %552 = vmatmul.mubr.msk.f32.vlgmr.msra.gmra.mxu0 %vm326_vm5, %v323_v25 }
  0x9b   :  { %554 = vmatprep.mubr.msk.f32.mxu0 %vm326_vm5, %v324_v26 }
  0x9e   :  { %555 = vmatmul.mubr.msk.f32.gmra.mxu0 %vm326_vm5, %v325_v27 }
  0xaa   :  { %v435_v40 = vpop.permute.xlu0 %434 }
 0x15a   :  { %v553_v30 = vpop.f32.mrf.mxu0 }
 0x15b   :  { %v425_v33 = vmul.f32 %v553_v30, %v553_v30 }
 0x15c   :  { %v405_v31 = vpop.f32.mrf.mxu0 }
 0x15d   :  { %v424_v8 = vmul.f32 %v405_v31, %v405_v31 }
 0x15e   :  { %v556_v32 = vpop.f32.mrf.mxu0 }
 0x15f   :  { %v427_v34 = vmul.f32 %v556_v32, %v556_v32 }
 0x160   :  { %v415_v35 = vpop.f32.mrf.mxu0 }
 0x161   :  { %v426_v36 = vmul.f32 %v415_v35, %v415_v35  ;;  %v429_v37 = vadd.f32 %v427_v34, %v425_v33 }
 0x163   :  { %v428_v38 = vadd.f32 %v426_v36, %v424_v8  ;;  %558 = vmatpush3.msra.mxu1 %v429_v37 }
 0x164   :  { %559 = vmatprep.subr.mxu1 %v625_v28 }
 0x165   :  { %560 = vmatpush3.msra.mxu1 %v428_v38 }
 0x166   :  { %562 = vmatmul.mubr.msk.f32.vlgmr.msra.gmra.mxu1 %vm326_vm5, %v430_v39 }
 0x226   :  { %v506_v41 = vpop.f32.mrf.mxu1 }
 0x227   :  { %v507_v42 = vadd.f32 %v506_v41, %v435_v40 }
 0x228   :  { %v563_v43 = vpop.f32.mrf.mxu1 }
 0x229   :  { %510 = vst [vmem:[#allocation2] sm:$0xf] %v507_v42 }
 0x22a   :  { %604 = shalt.err (!%p601_p4)
}
 0x22b   :  { %520 = dma.vmem_to_hbm [thread:$0]  %s518_s8, 64, %s722_s5, [#allocation3]  }
 0x22c   :  { %613 = dma.done.wait [#allocation3], 64  }
 0x22d   :  { %614 = vsyncadd [#allocation3], 4294967232 }
 0x22e   :  { %524 = vsyncpa [#allocation3], 1 }

</bundles_post_ra>
